<compile_context>
chip_gen: v7x
topology: tpu7x:2x2x1
jax: 0.10.0
libtpu: 0.0.40
codegen_flags: <defaults>
</compile_context>

<pallas_src>
import functools

import numpy as np

import jax
import jax.numpy as jnp
from jax import lax
from jax.experimental import pallas as pl
from jax.experimental.pallas import tpu as pltpu


def duration_predictor_kernel(x_ref, mcol_ref, mrow_ref, tap_ref,
                              w1_ref, b1_ref, g1_ref, be1_ref,
                              w2_ref, b2_ref, g2_ref, be2_ref,
                              wl_ref, bl_ref,
                              o_ref, *, ksize, batch_block, seq_len):
    # TODO(synk): nn.Dropout is identity in eval mode; not implemented.
    M = batch_block * seq_len
    pad = (ksize - 1) // 2
    mxu_dtype = x_ref.dtype                    # matmul input dtype (bf16 by default)

    keep_col = 1.0 - mcol_ref[...]             # (M, 1) f32 keep mask (hidden masking)
    keep_row = 1.0 - mrow_ref[0]               # (1, M) f32 keep mask (lane-dense out)

    def conv_relu_ln(h_m, w_ref, b_ref, g_ref, beta_ref):
        """SAME Conv1d (shifted-matmul taps) + bias + ReLU + channel LayerNorm."""
        cout = w_ref.shape[2]
        y = jnp.zeros((M, cout), jnp.float32)
        for k in range(ksize):                 # cross-correlation taps
            d = k - pad
            if d == 0:
                hk = h_m
            else:
                # hk[m] = h[m + d]; tap_ref[k] zeroes rows whose shift would
                # cross a sequence boundary (SAME-padding halo and packed-batch
                # seams), so the wrap-around rows never contribute.
                hk = jnp.roll(h_m, -d, axis=0) * tap_ref[k]
            y = y + jnp.dot(hk, w_ref[k], preferred_element_type=jnp.float32)
        y = y + b_ref[...]                     # (1, Cout) broadcast bias
        y = jnp.maximum(y, 0.0)                # ReLU
        # Single-pass LayerNorm stats over channels (f32): var = E[y^2] - mu^2.
        inv_c = 1.0 / cout
        mu = jnp.sum(y, axis=-1, keepdims=True) * inv_c
        var = jnp.sum(y * y, axis=-1, keepdims=True) * inv_c - mu * mu
        y = (y - mu) * lax.rsqrt(var + 1e-5)
        return y * g_ref[...] + beta_ref[...]

    h = conv_relu_ln(x_ref[...], w1_ref, b1_ref, g1_ref, be1_ref) * keep_col
    h = conv_relu_ln(h.astype(mxu_dtype), w2_ref, b2_ref, g2_ref, be2_ref) * keep_col

    # Fused final Linear(n_chans -> 1): (1, C) x (M, C)^T -> lane-dense (1, M),
    # so the (1, 1, M) output block gets unmasked vector stores.
    out_row = lax.dot_general(
        wl_ref[...], h.astype(mxu_dtype),
        dimension_numbers=(((1,), (1,)), ((), ())),
        preferred_element_type=jnp.float32)    # (1, M)
    o_ref[0] = (out_row + bl_ref[...]) * keep_row


def _pick_batch_block(B, T, idim, n_chans, ksize, io_itemsize,
                      budget_bytes=24 * 1024 * 1024, min_grid_steps=1):
    """Pick how many batch rows (Bb) to pack per grid step.

    Packs as much as fits the VMEM budget (fills the MXU M dimension and
    amortizes the ~0.35us per-grid-step overhead), preferring
      1) at least `min_grid_steps` grid steps (set 2 on v7x so both TensorCores
         get a 'parallel' grid step), then
      2) M = Bb*T a multiple of 128 (fully lane-dense output stores),
    while keeping the (Bb*T, ...) sublane rule (Bb*T % 8 == 0 or Bb == B).
    """
    cands = [bb for bb in range(1, B + 1)
             if B % bb == 0 and ((bb * T) % 8 == 0 or bb == B)]

    def footprint(bb):
        # Double-buffered per-step blocks + weight buffers + live f32/bf16 temps.
        m = bb * T
        x_blk = 2 * m * idim * io_itemsize
        msk_blk = 2 * (m + m) * 4                      # col + row masks (f32)
        out_blk = 2 * m * 4
        tap_blk = 2 * ksize * m * io_itemsize
        wts = 2 * ksize * (idim + n_chans) * n_chans * io_itemsize \
            + 2 * n_chans * io_itemsize
        small = 2 * (8 * n_chans + 2) * 4              # biases / LN params / bl
        temps = m * (idim * io_itemsize + n_chans * (8 + 2 * io_itemsize) + 32)
        return x_blk + msk_blk + out_blk + tap_blk + wts + small + temps

    fitting = [bb for bb in cands if footprint(bb) <= budget_bytes]
    if not fitting:
        fitting = [min(cands)]                         # best-effort fallback
    steps_ok = [bb for bb in fitting if B // bb >= min_grid_steps]
    pool = steps_ok if steps_ok else fitting
    lane_ok = [bb for bb in pool if (bb * T) % 128 == 0]
    return max(lane_ok) if lane_ok else max(pool)


def duration_predictor(xs, x_masks, params, *, ksize=3,
                       mxu_dtype=jnp.bfloat16, batch_block=None,
                       min_grid_steps=1, vmem_limit_bytes=48 * 1024 * 1024):
    """xs: (B, T, idim) f32, x_masks: (B, T) bool/float. Returns (B, T) f32."""
    B, T, idim = xs.shape
    n_chans = params["w1"].shape[2]
    if x_masks is None:
        x_masks = jnp.zeros((B, T), jnp.float32)

    io_itemsize = jnp.dtype(mxu_dtype).itemsize
    if batch_block is None:
        batch_block = _pick_batch_block(B, T, idim, n_chans, ksize, io_itemsize,
                                        min_grid_steps=min_grid_steps)
    Bb = batch_block
    nb = B // Bb
    M = Bb * T

    mask_f = x_masks.astype(jnp.float32)
    x_flat = xs.reshape(B * T, idim).astype(mxu_dtype)   # packed (batch, time) rows
    mask_col = mask_f.reshape(B * T, 1)                  # column layout (hidden mask)
    mask_row = mask_f.reshape(nb, 1, M)                  # lane-dense layout (out mask)

    # Per-tap validity masks: row m is time t = m % T; tap offset d = k - pad is
    # valid iff 0 <= t + d < T.  Built host-side (identical for every grid step)
    # and passed as an input so the kernel captures no trace-time constants.
    pad = (ksize - 1) // 2
    t = np.arange(M) % T
    tap_np = np.stack(
        [((t + (k - pad) >= 0) & (t + (k - pad) < T)).astype(np.float32)
         for k in range(ksize)], axis=0).reshape(ksize, M, 1)
    tap_mask = jnp.asarray(tap_np).astype(mxu_dtype)

    # Ship activations + matmul weights in the MXU dtype (halves DMA/VMEM when
    # bf16); biases / LayerNorm params stay f32 for the f32 epilogue.
    w1 = params["w1"].astype(mxu_dtype)
    w2 = params["w2"].astype(mxu_dtype)
    wl = params["wl"].astype(mxu_dtype)

    kernel = functools.partial(duration_predictor_kernel, ksize=ksize,
                               batch_block=Bb, seq_len=T)

    full3 = lambda b: (0, 0, 0)
    full2 = lambda b: (0, 0)

    # NOTE: the constant-index weight blocks could additionally be marked
    # single-buffered (pipeline_mode) to reclaim their second pipeline buffer;
    # left default here for portability.
    out = pl.pallas_call(
        kernel,
        out_shape=jax.ShapeDtypeStruct((nb, 1, M), jnp.float32),
        grid_spec=pltpu.PrefetchScalarGridSpec(
            num_scalar_prefetch=0,
            grid=(nb,),
            in_specs=[
                pl.BlockSpec((M, idim), lambda b: (b, 0)),            # xs (packed rows)
                pl.BlockSpec((M, 1), lambda b: (b, 0)),               # mask, column layout
                pl.BlockSpec((1, 1, M), lambda b: (b, 0, 0)),         # mask, lane-dense
                pl.BlockSpec((ksize, M, 1), full3),                   # per-tap seam masks
                pl.BlockSpec((ksize, idim, n_chans), full3),          # conv1 weight
                pl.BlockSpec((1, n_chans), full2),                    # conv1 bias
                pl.BlockSpec((1, n_chans), full2),                    # ln1 gamma
                pl.BlockSpec((1, n_chans), full2),                    # ln1 beta
                pl.BlockSpec((ksize, n_chans, n_chans), full3),       # conv2 weight
                pl.BlockSpec((1, n_chans), full2),                    # conv2 bias
                pl.BlockSpec((1, n_chans), full2),                    # ln2 gamma
                pl.BlockSpec((1, n_chans), full2),                    # ln2 beta
                pl.BlockSpec((1, n_chans), full2),                    # linear weight
                pl.BlockSpec((1, 1), full2),                          # linear bias
            ],
            out_specs=pl.BlockSpec((1, 1, M), lambda b: (b, 0, 0)),   # lane-dense out
        ),
        compiler_params=pltpu.CompilerParams(
            dimension_semantics=("parallel",),
            vmem_limit_bytes=vmem_limit_bytes),
    )(x_flat, mask_col, mask_row, tap_mask,
      w1, params["b1"], params["g1"], params["be1"],
      w2, params["b2"], params["g2"], params["be2"],
      wl, params["bl"])
    return out.reshape(B, T)


def reference(xs, x_masks, params, ksize=3):
    """Pure-JAX f32 reference mirroring the PyTorch forward semantics."""
    keep = (1.0 - x_masks.astype(jnp.float32))[:, :, None]     # (B, T, 1)
    h = xs
    for (w, b, g, be) in [
        (params["w1"], params["b1"], params["g1"], params["be1"]),
        (params["w2"], params["b2"], params["g2"], params["be2"]),
    ]:
        pad = (ksize - 1) // 2
        hp = jnp.pad(h, ((0, 0), (pad, pad), (0, 0)))
        T = h.shape[1]
        y = jnp.zeros((h.shape[0], T, w.shape[2]), jnp.float32) + b.reshape(1, 1, -1)
        for k in range(ksize):
            y = y + jnp.einsum("btc,cd->btd", hp[:, k:k + T], w[k],
                               precision=lax.Precision.HIGHEST)
        y = jnp.maximum(y, 0.0)
        mu = y.mean(-1, keepdims=True)
        var = ((y - mu) ** 2).mean(-1, keepdims=True)
        y = (y - mu) * lax.rsqrt(var + 1e-5)
        y = y * g.reshape(1, 1, -1) + be.reshape(1, 1, -1)
        h = y * keep
    out = jnp.einsum("btc,c->bt", h, params["wl"][0],
                     precision=lax.Precision.HIGHEST) + params["bl"][0, 0]
    return out * keep[:, :, 0]


if __name__ == "__main__":
    B, T, idim, n_chans, ksize = 2, 16, 32, 64, 3

    key = jax.random.PRNGKey(0)
    ks = jax.random.split(key, 12)
    s = 0.1
    # NOTE: conv weights are stored as (kernel, in_chans, out_chans), i.e. the
    # transpose-per-tap of PyTorch's (out_chans, in_chans, kernel) layout.
    params = {
        "w1": s * jax.random.normal(ks[0], (ksize, idim, n_chans), jnp.float32),
        "b1": s * jax.random.normal(ks[1], (1, n_chans), jnp.float32),
        "g1": 1.0 + s * jax.random.normal(ks[2], (1, n_chans), jnp.float32),
        "be1": s * jax.random.normal(ks[3], (1, n_chans), jnp.float32),
        "w2": s * jax.random.normal(ks[4], (ksize, n_chans, n_chans), jnp.float32),
        "b2": s * jax.random.normal(ks[5], (1, n_chans), jnp.float32),
        "g2": 1.0 + s * jax.random.normal(ks[6], (1, n_chans), jnp.float32),
        "be2": s * jax.random.normal(ks[7], (1, n_chans), jnp.float32),
        "wl": s * jax.random.normal(ks[8], (1, n_chans), jnp.float32),
        "bl": s * jax.random.normal(ks[9], (1, 1), jnp.float32),
    }

    xs = jax.random.normal(ks[10], (B, T, idim), jnp.float32)
    # boolean padding mask (True = padded frame); sequence lengths 16 and 12
    lens = jnp.array([16, 12])
    x_masks = jnp.arange(T)[None, :] >= lens[:, None]

    out = duration_predictor(xs, x_masks, params, ksize=ksize)
    out = jax.block_until_ready(out)

    ref = reference(xs, x_masks, params, ksize)
    assert out.shape == (B, T), out.shape
    # bf16 tap matmuls (f32 accumulation) -> slightly relaxed tolerance vs f32 ref.
    assert jnp.allclose(out, ref, atol=2e-2, rtol=2e-2), float(
        jnp.max(jnp.abs(out - ref)))
    print("KERNEL_OK")
</pallas_src>

<mosaic_0001>
module attributes {stable_mosaic.version = 11 : i64} {
  func.func @duration_predictor_kernel(%arg0: i32, %arg1: memref<32x32xbf16, #tpu.memory_space<vmem>>, %arg2: memref<32x1xf32, #tpu.memory_space<vmem>>, %arg3: memref<1x1x32xf32, #tpu.memory_space<vmem>>, %arg4: memref<3x32x1xbf16, #tpu.memory_space<vmem>>, %arg5: memref<3x32x64xbf16, #tpu.memory_space<vmem>>, %arg6: memref<1x64xf32, #tpu.memory_space<vmem>>, %arg7: memref<1x64xf32, #tpu.memory_space<vmem>>, %arg8: memref<1x64xf32, #tpu.memory_space<vmem>>, %arg9: memref<3x64x64xbf16, #tpu.memory_space<vmem>>, %arg10: memref<1x64xf32, #tpu.memory_space<vmem>>, %arg11: memref<1x64xf32, #tpu.memory_space<vmem>>, %arg12: memref<1x64xf32, #tpu.memory_space<vmem>>, %arg13: memref<1x64xbf16, #tpu.memory_space<vmem>>, %arg14: memref<1x1xf32, #tpu.memory_space<vmem>>, %arg15: memref<1x1x32xf32, #tpu.memory_space<vmem>>) attributes {dimension_semantics = [#tpu.dimension_semantics<parallel>], iteration_bounds = array<i64: 1>, scalar_prefetch = 0 : i64, scratch_operands = 0 : i64, tpu.core_type = #tpu.core_type<tc>, window_params = [{transform_indices = @transform_0, window_bounds = array<i64: 32, 32>}, {transform_indices = @transform_1, window_bounds = array<i64: 32, 1>}, {transform_indices = @transform_2, window_bounds = array<i64: 1, 1, 32>}, {pipeline_mode = #tpu.pipeline_mode<synchronous>, transform_indices = @transform_3, window_bounds = array<i64: 3, 32, 1>}, {pipeline_mode = #tpu.pipeline_mode<synchronous>, transform_indices = @transform_4, window_bounds = array<i64: 3, 32, 64>}, {pipeline_mode = #tpu.pipeline_mode<synchronous>, transform_indices = @transform_5, window_bounds = array<i64: 1, 64>}, {pipeline_mode = #tpu.pipeline_mode<synchronous>, transform_indices = @transform_6, window_bounds = array<i64: 1, 64>}, {pipeline_mode = #tpu.pipeline_mode<synchronous>, transform_indices = @transform_7, window_bounds = array<i64: 1, 64>}, {pipeline_mode = #tpu.pipeline_mode<synchronous>, transform_indices = @transform_8, window_bounds = array<i64: 3, 64, 64>}, {pipeline_mode = #tpu.pipeline_mode<synchronous>, transform_indices = @transform_9, window_bounds = array<i64: 1, 64>}, {pipeline_mode = #tpu.pipeline_mode<synchronous>, transform_indices = @transform_10, window_bounds = array<i64: 1, 64>}, {pipeline_mode = #tpu.pipeline_mode<synchronous>, transform_indices = @transform_11, window_bounds = array<i64: 1, 64>}, {pipeline_mode = #tpu.pipeline_mode<synchronous>, transform_indices = @transform_12, window_bounds = array<i64: 1, 64>}, {pipeline_mode = #tpu.pipeline_mode<synchronous>, transform_indices = @transform_13, window_bounds = array<i64: 1, 1>}, {transform_indices = @transform_14, window_bounds = array<i64: 1, 1, 32>}]} {
    %c0 = arith.constant 0 : index
    %c0_0 = arith.constant 0 : index
    %0 = vector.load %arg2[%c0, %c0_0] : memref<32x1xf32, #tpu.memory_space<vmem>>, vector<32x1xf32>
    %cst = arith.constant 1.000000e+00 : f32
    %1 = vector.broadcast %cst : f32 to vector<32x1xf32>
    %2 = arith.subf %1, %0 : vector<32x1xf32>
    %c0_1 = arith.constant 0 : index
    %c0_2 = arith.constant 0 : index
    %c0_3 = arith.constant 0 : index
    %3 = vector.load %arg3[%c0_1, %c0_2, %c0_3] : memref<1x1x32xf32, #tpu.memory_space<vmem>>, vector<1x1x32xf32>
    %4 = vector.shape_cast %3 : vector<1x1x32xf32> to vector<1x32xf32>
    %cst_4 = arith.constant 1.000000e+00 : f32
    %5 = vector.broadcast %cst_4 : f32 to vector<1x32xf32>
    %6 = arith.subf %5, %4 : vector<1x32xf32>
    %c0_5 = arith.constant 0 : index
    %c0_6 = arith.constant 0 : index
    %7 = vector.load %arg1[%c0_5, %c0_6] : memref<32x32xbf16, #tpu.memory_space<vmem>>, vector<32x32xbf16>
    %cst_7 = arith.constant 0.000000e+00 : f32
    %8 = vector.broadcast %cst_7 : f32 to vector<32x64xf32>
    %9 = vector.extract_strided_slice %7 {offsets = [31, 0], sizes = [1, 32], strides = [1, 1]} : vector<32x32xbf16> to vector<1x32xbf16>
    %10 = vector.extract_strided_slice %7 {offsets = [0, 0], sizes = [31, 32], strides = [1, 1]} : vector<32x32xbf16> to vector<31x32xbf16>
    %11 = tpu.concatenate %9, %10 in 0 : vector<1x32xbf16>, vector<31x32xbf16> -> vector<32x32xbf16>
    %c0_8 = arith.constant 0 : index
    %c0_9 = arith.constant 0 : index
    %c0_10 = arith.constant 0 : index
    %12 = vector.load %arg4[%c0_8, %c0_9, %c0_10] : memref<3x32x1xbf16, #tpu.memory_space<vmem>>, vector<1x32x1xbf16>
    %13 = vector.shape_cast %12 : vector<1x32x1xbf16> to vector<32x1xbf16>
    %14 = vector.broadcast %13 : vector<32x1xbf16> to vector<32x32xbf16>
    %15 = arith.mulf %11, %14 : vector<32x32xbf16>
    %c0_11 = arith.constant 0 : index
    %c0_12 = arith.constant 0 : index
    %c0_13 = arith.constant 0 : index
    %16 = vector.load %arg5[%c0_11, %c0_12, %c0_13] : memref<3x32x64xbf16, #tpu.memory_space<vmem>>, vector<1x32x64xbf16>
    %17 = vector.shape_cast %16 : vector<1x32x64xbf16> to vector<32x64xbf16>
    %cst_14 = arith.constant dense<0.000000e+00> : vector<32x64xf32>
    %18 = tpu.matmul %15, %17, %cst_14 {dimension_numbers = #tpu.dot_dimension_numbers<[1], [0], [0], [1], [0, 0, 1, 1], [], []>} : vector<32x32xbf16>, vector<32x64xbf16>, vector<32x64xf32> -> vector<32x64xf32>
    %19 = arith.addf %8, %18 : vector<32x64xf32>
    %c1 = arith.constant 1 : index
    %c0_15 = arith.constant 0 : index
    %c0_16 = arith.constant 0 : index
    %20 = vector.load %arg5[%c1, %c0_15, %c0_16] : memref<3x32x64xbf16, #tpu.memory_space<vmem>>, vector<1x32x64xbf16>
    %21 = vector.shape_cast %20 : vector<1x32x64xbf16> to vector<32x64xbf16>
    %cst_17 = arith.constant dense<0.000000e+00> : vector<32x64xf32>
    %22 = tpu.matmul %7, %21, %cst_17 {dimension_numbers = #tpu.dot_dimension_numbers<[1], [0], [0], [1], [0, 0, 1, 1], [], []>} : vector<32x32xbf16>, vector<32x64xbf16>, vector<32x64xf32> -> vector<32x64xf32>
    %23 = arith.addf %19, %22 : vector<32x64xf32>
    %24 = vector.extract_strided_slice %7 {offsets = [1, 0], sizes = [31, 32], strides = [1, 1]} : vector<32x32xbf16> to vector<31x32xbf16>
    %25 = vector.extract_strided_slice %7 {offsets = [0, 0], sizes = [1, 32], strides = [1, 1]} : vector<32x32xbf16> to vector<1x32xbf16>
    %26 = tpu.concatenate %24, %25 in 0 : vector<31x32xbf16>, vector<1x32xbf16> -> vector<32x32xbf16>
    %c2 = arith.constant 2 : index
    %c0_18 = arith.constant 0 : index
    %c0_19 = arith.constant 0 : index
    %27 = vector.load %arg4[%c2, %c0_18, %c0_19] : memref<3x32x1xbf16, #tpu.memory_space<vmem>>, vector<1x32x1xbf16>
    %28 = vector.shape_cast %27 : vector<1x32x1xbf16> to vector<32x1xbf16>
    %29 = vector.broadcast %28 : vector<32x1xbf16> to vector<32x32xbf16>
    %30 = arith.mulf %26, %29 : vector<32x32xbf16>
    %c2_20 = arith.constant 2 : index
    %c0_21 = arith.constant 0 : index
    %c0_22 = arith.constant 0 : index
    %31 = vector.load %arg5[%c2_20, %c0_21, %c0_22] : memref<3x32x64xbf16, #tpu.memory_space<vmem>>, vector<1x32x64xbf16>
    %32 = vector.shape_cast %31 : vector<1x32x64xbf16> to vector<32x64xbf16>
    %cst_23 = arith.constant dense<0.000000e+00> : vector<32x64xf32>
    %33 = tpu.matmul %30, %32, %cst_23 {dimension_numbers = #tpu.dot_dimension_numbers<[1], [0], [0], [1], [0, 0, 1, 1], [], []>} : vector<32x32xbf16>, vector<32x64xbf16>, vector<32x64xf32> -> vector<32x64xf32>
    %34 = arith.addf %23, %33 : vector<32x64xf32>
    %c0_24 = arith.constant 0 : index
    %c0_25 = arith.constant 0 : index
    %35 = vector.load %arg6[%c0_24, %c0_25] : memref<1x64xf32, #tpu.memory_space<vmem>>, vector<1x64xf32>
    %36 = vector.broadcast %35 : vector<1x64xf32> to vector<32x64xf32>
    %37 = arith.addf %34, %36 : vector<32x64xf32>
    %cst_26 = arith.constant 0.000000e+00 : f32
    %38 = vector.broadcast %cst_26 : f32 to vector<32x64xf32>
    %39 = arith.maximumf %37, %38 : vector<32x64xf32>
    %cst_27 = arith.constant dense<0.000000e+00> : vector<32xf32>
    %40 = vector.multi_reduction <add>, %39, %cst_27 [1] : vector<32x64xf32> to vector<32xf32>
    %41 = vector.shape_cast %40 : vector<32xf32> to vector<32x1xf32>
    %cst_28 = arith.constant 1.562500e-02 : f32
    %42 = vector.broadcast %cst_28 : f32 to vector<32x1xf32>
    %43 = arith.mulf %41, %42 : vector<32x1xf32>
    %44 = arith.mulf %39, %39 : vector<32x64xf32>
    %cst_29 = arith.constant dense<0.000000e+00> : vector<32xf32>
    %45 = vector.multi_reduction <add>, %44, %cst_29 [1] : vector<32x64xf32> to vector<32xf32>
    %46 = vector.shape_cast %45 : vector<32xf32> to vector<32x1xf32>
    %cst_30 = arith.constant 1.562500e-02 : f32
    %47 = vector.broadcast %cst_30 : f32 to vector<32x1xf32>
    %48 = arith.mulf %46, %47 : vector<32x1xf32>
    %49 = arith.mulf %43, %43 : vector<32x1xf32>
    %50 = arith.subf %48, %49 : vector<32x1xf32>
    %51 = vector.broadcast %43 : vector<32x1xf32> to vector<32x64xf32>
    %52 = arith.subf %39, %51 : vector<32x64xf32>
    %cst_31 = arith.constant 9.99999974E-6 : f32
    %53 = vector.broadcast %cst_31 : f32 to vector<32x1xf32>
    %54 = arith.addf %50, %53 : vector<32x1xf32>
    %55 = math.rsqrt %54 : vector<32x1xf32>
    %56 = vector.broadcast %55 : vector<32x1xf32> to vector<32x64xf32>
    %57 = arith.mulf %52, %56 : vector<32x64xf32>
    %c0_32 = arith.constant 0 : index
    %c0_33 = arith.constant 0 : index
    %58 = vector.load %arg7[%c0_32, %c0_33] : memref<1x64xf32, #tpu.memory_space<vmem>>, vector<1x64xf32>
    %59 = vector.broadcast %58 : vector<1x64xf32> to vector<32x64xf32>
    %60 = arith.mulf %57, %59 : vector<32x64xf32>
    %c0_34 = arith.constant 0 : index
    %c0_35 = arith.constant 0 : index
    %61 = vector.load %arg8[%c0_34, %c0_35] : memref<1x64xf32, #tpu.memory_space<vmem>>, vector<1x64xf32>
    %62 = vector.broadcast %61 : vector<1x64xf32> to vector<32x64xf32>
    %63 = arith.addf %60, %62 : vector<32x64xf32>
    %64 = vector.broadcast %2 : vector<32x1xf32> to vector<32x64xf32>
    %65 = arith.mulf %63, %64 : vector<32x64xf32>
    %66 = arith.truncf %65 : vector<32x64xf32> to vector<32x64xbf16>
    %cst_36 = arith.constant 0.000000e+00 : f32
    %67 = vector.broadcast %cst_36 : f32 to vector<32x64xf32>
    %68 = vector.extract_strided_slice %66 {offsets = [31, 0], sizes = [1, 64], strides = [1, 1]} : vector<32x64xbf16> to vector<1x64xbf16>
    %69 = vector.extract_strided_slice %66 {offsets = [0, 0], sizes = [31, 64], strides = [1, 1]} : vector<32x64xbf16> to vector<31x64xbf16>
    %70 = tpu.concatenate %68, %69 in 0 : vector<1x64xbf16>, vector<31x64xbf16> -> vector<32x64xbf16>
    %c0_37 = arith.constant 0 : index
    %c0_38 = arith.constant 0 : index
    %c0_39 = arith.constant 0 : index
    %71 = vector.load %arg4[%c0_37, %c0_38, %c0_39] : memref<3x32x1xbf16, #tpu.memory_space<vmem>>, vector<1x32x1xbf16>
    %72 = vector.shape_cast %71 : vector<1x32x1xbf16> to vector<32x1xbf16>
    %73 = vector.broadcast %72 : vector<32x1xbf16> to vector<32x64xbf16>
    %74 = arith.mulf %70, %73 : vector<32x64xbf16>
    %c0_40 = arith.constant 0 : index
    %c0_41 = arith.constant 0 : index
    %c0_42 = arith.constant 0 : index
    %75 = vector.load %arg9[%c0_40, %c0_41, %c0_42] : memref<3x64x64xbf16, #tpu.memory_space<vmem>>, vector<1x64x64xbf16>
    %76 = vector.shape_cast %75 : vector<1x64x64xbf16> to vector<64x64xbf16>
    %cst_43 = arith.constant dense<0.000000e+00> : vector<32x64xf32>
    %77 = tpu.matmul %74, %76, %cst_43 {dimension_numbers = #tpu.dot_dimension_numbers<[1], [0], [0], [1], [0, 0, 1, 1], [], []>} : vector<32x64xbf16>, vector<64x64xbf16>, vector<32x64xf32> -> vector<32x64xf32>
    %78 = arith.addf %67, %77 : vector<32x64xf32>
    %c1_44 = arith.constant 1 : index
    %c0_45 = arith.constant 0 : index
    %c0_46 = arith.constant 0 : index
    %79 = vector.load %arg9[%c1_44, %c0_45, %c0_46] : memref<3x64x64xbf16, #tpu.memory_space<vmem>>, vector<1x64x64xbf16>
    %80 = vector.shape_cast %79 : vector<1x64x64xbf16> to vector<64x64xbf16>
    %cst_47 = arith.constant dense<0.000000e+00> : vector<32x64xf32>
    %81 = tpu.matmul %66, %80, %cst_47 {dimension_numbers = #tpu.dot_dimension_numbers<[1], [0], [0], [1], [0, 0, 1, 1], [], []>} : vector<32x64xbf16>, vector<64x64xbf16>, vector<32x64xf32> -> vector<32x64xf32>
    %82 = arith.addf %78, %81 : vector<32x64xf32>
    %83 = vector.extract_strided_slice %66 {offsets = [1, 0], sizes = [31, 64], strides = [1, 1]} : vector<32x64xbf16> to vector<31x64xbf16>
    %84 = vector.extract_strided_slice %66 {offsets = [0, 0], sizes = [1, 64], strides = [1, 1]} : vector<32x64xbf16> to vector<1x64xbf16>
    %85 = tpu.concatenate %83, %84 in 0 : vector<31x64xbf16>, vector<1x64xbf16> -> vector<32x64xbf16>
    %c2_48 = arith.constant 2 : index
    %c0_49 = arith.constant 0 : index
    %c0_50 = arith.constant 0 : index
    %86 = vector.load %arg4[%c2_48, %c0_49, %c0_50] : memref<3x32x1xbf16, #tpu.memory_space<vmem>>, vector<1x32x1xbf16>
    %87 = vector.shape_cast %86 : vector<1x32x1xbf16> to vector<32x1xbf16>
    %88 = vector.broadcast %87 : vector<32x1xbf16> to vector<32x64xbf16>
    %89 = arith.mulf %85, %88 : vector<32x64xbf16>
    %c2_51 = arith.constant 2 : index
    %c0_52 = arith.constant 0 : index
    %c0_53 = arith.constant 0 : index
    %90 = vector.load %arg9[%c2_51, %c0_52, %c0_53] : memref<3x64x64xbf16, #tpu.memory_space<vmem>>, vector<1x64x64xbf16>
    %91 = vector.shape_cast %90 : vector<1x64x64xbf16> to vector<64x64xbf16>
    %cst_54 = arith.constant dense<0.000000e+00> : vector<32x64xf32>
    %92 = tpu.matmul %89, %91, %cst_54 {dimension_numbers = #tpu.dot_dimension_numbers<[1], [0], [0], [1], [0, 0, 1, 1], [], []>} : vector<32x64xbf16>, vector<64x64xbf16>, vector<32x64xf32> -> vector<32x64xf32>
    %93 = arith.addf %82, %92 : vector<32x64xf32>
    %c0_55 = arith.constant 0 : index
    %c0_56 = arith.constant 0 : index
    %94 = vector.load %arg10[%c0_55, %c0_56] : memref<1x64xf32, #tpu.memory_space<vmem>>, vector<1x64xf32>
    %95 = vector.broadcast %94 : vector<1x64xf32> to vector<32x64xf32>
    %96 = arith.addf %93, %95 : vector<32x64xf32>
    %cst_57 = arith.constant 0.000000e+00 : f32
    %97 = vector.broadcast %cst_57 : f32 to vector<32x64xf32>
    %98 = arith.maximumf %96, %97 : vector<32x64xf32>
    %cst_58 = arith.constant dense<0.000000e+00> : vector<32xf32>
    %99 = vector.multi_reduction <add>, %98, %cst_58 [1] : vector<32x64xf32> to vector<32xf32>
    %100 = vector.shape_cast %99 : vector<32xf32> to vector<32x1xf32>
    %cst_59 = arith.constant 1.562500e-02 : f32
    %101 = vector.broadcast %cst_59 : f32 to vector<32x1xf32>
    %102 = arith.mulf %100, %101 : vector<32x1xf32>
    %103 = arith.mulf %98, %98 : vector<32x64xf32>
    %cst_60 = arith.constant dense<0.000000e+00> : vector<32xf32>
    %104 = vector.multi_reduction <add>, %103, %cst_60 [1] : vector<32x64xf32> to vector<32xf32>
    %105 = vector.shape_cast %104 : vector<32xf32> to vector<32x1xf32>
    %cst_61 = arith.constant 1.562500e-02 : f32
    %106 = vector.broadcast %cst_61 : f32 to vector<32x1xf32>
    %107 = arith.mulf %105, %106 : vector<32x1xf32>
    %108 = arith.mulf %102, %102 : vector<32x1xf32>
    %109 = arith.subf %107, %108 : vector<32x1xf32>
    %110 = vector.broadcast %102 : vector<32x1xf32> to vector<32x64xf32>
    %111 = arith.subf %98, %110 : vector<32x64xf32>
    %cst_62 = arith.constant 9.99999974E-6 : f32
    %112 = vector.broadcast %cst_62 : f32 to vector<32x1xf32>
    %113 = arith.addf %109, %112 : vector<32x1xf32>
    %114 = math.rsqrt %113 : vector<32x1xf32>
    %115 = vector.broadcast %114 : vector<32x1xf32> to vector<32x64xf32>
    %116 = arith.mulf %111, %115 : vector<32x64xf32>
    %c0_63 = arith.constant 0 : index
    %c0_64 = arith.constant 0 : index
    %117 = vector.load %arg11[%c0_63, %c0_64] : memref<1x64xf32, #tpu.memory_space<vmem>>, vector<1x64xf32>
    %118 = vector.broadcast %117 : vector<1x64xf32> to vector<32x64xf32>
    %119 = arith.mulf %116, %118 : vector<32x64xf32>
    %c0_65 = arith.constant 0 : index
    %c0_66 = arith.constant 0 : index
    %120 = vector.load %arg12[%c0_65, %c0_66] : memref<1x64xf32, #tpu.memory_space<vmem>>, vector<1x64xf32>
    %121 = vector.broadcast %120 : vector<1x64xf32> to vector<32x64xf32>
    %122 = arith.addf %119, %121 : vector<32x64xf32>
    %123 = vector.broadcast %2 : vector<32x1xf32> to vector<32x64xf32>
    %124 = arith.mulf %122, %123 : vector<32x64xf32>
    %c0_67 = arith.constant 0 : index
    %c0_68 = arith.constant 0 : index
    %125 = vector.load %arg13[%c0_67, %c0_68] : memref<1x64xbf16, #tpu.memory_space<vmem>>, vector<1x64xbf16>
    %126 = arith.truncf %124 : vector<32x64xf32> to vector<32x64xbf16>
    %cst_69 = arith.constant dense<0.000000e+00> : vector<1x32xf32>
    %127 = tpu.matmul %125, %126, %cst_69 {dimension_numbers = #tpu.dot_dimension_numbers<[1], [1], [0], [0], [0, 0, 1, 0], [], []>} : vector<1x64xbf16>, vector<32x64xbf16>, vector<1x32xf32> -> vector<1x32xf32>
    %c0_70 = arith.constant 0 : index
    %c0_71 = arith.constant 0 : index
    %128 = vector.load %arg14[%c0_70, %c0_71] : memref<1x1xf32, #tpu.memory_space<vmem>>, vector<1x1xf32>
    %129 = vector.broadcast %128 : vector<1x1xf32> to vector<1x32xf32>
    %130 = arith.addf %127, %129 : vector<1x32xf32>
    %131 = arith.mulf %130, %6 : vector<1x32xf32>
    %c0_72 = arith.constant 0 : index
    %c0_73 = arith.constant 0 : index
    %c0_74 = arith.constant 0 : index
    %132 = vector.load %arg15[%c0_72, %c0_73, %c0_74] : memref<1x1x32xf32, #tpu.memory_space<vmem>>, vector<1x1x32xf32>
    %133 = vector.shape_cast %132 : vector<1x1x32xf32> to vector<1x32xf32>
    %134 = vector.shape_cast %131 : vector<1x32xf32> to vector<1x1x32xf32>
    tpu.vector_store %arg15[%c0_72, %c0_73, %c0_74], %134 {strides = array<i32>} : memref<1x1x32xf32, #tpu.memory_space<vmem>>, vector<1x1x32xf32>,
    return
  }
  func.func @transform_0(%arg0: i32) -> (i32, i32) {
    %c0_i32 = arith.constant 0 : i32
    %c0_i32_0 = arith.constant 0 : i32
    return %arg0, %c0_i32 : i32, i32
  }
  func.func @transform_1(%arg0: i32) -> (i32, i32) {
    %c0_i32 = arith.constant 0 : i32
    %c0_i32_0 = arith.constant 0 : i32
    return %arg0, %c0_i32 : i32, i32
  }
  func.func @transform_2(%arg0: i32) -> (i32, i32, i32) {
    %c0_i32 = arith.constant 0 : i32
    %c0_i32_0 = arith.constant 0 : i32
    %c0_i32_1 = arith.constant 0 : i32
    return %arg0, %c0_i32, %c0_i32_0 : i32, i32, i32
  }
  func.func @transform_3(%arg0: i32) -> (i32, i32, i32) {
    %c0_i32 = arith.constant 0 : i32
    %c0_i32_0 = arith.constant 0 : i32
    %c0_i32_1 = arith.constant 0 : i32
    %c0_i32_2 = arith.constant 0 : i32
    return %c0_i32, %c0_i32_0, %c0_i32_1 : i32, i32, i32
  }
  func.func @transform_4(%arg0: i32) -> (i32, i32, i32) {
    %c0_i32 = arith.constant 0 : i32
    %c0_i32_0 = arith.constant 0 : i32
    %c0_i32_1 = arith.constant 0 : i32
    %c0_i32_2 = arith.constant 0 : i32
    return %c0_i32, %c0_i32_0, %c0_i32_1 : i32, i32, i32
  }
  func.func @transform_5(%arg0: i32) -> (i32, i32) {
    %c0_i32 = arith.constant 0 : i32
    %c0_i32_0 = arith.constant 0 : i32
    %c0_i32_1 = arith.constant 0 : i32
    return %c0_i32, %c0_i32_0 : i32, i32
  }
  func.func @transform_6(%arg0: i32) -> (i32, i32) {
    %c0_i32 = arith.constant 0 : i32
    %c0_i32_0 = arith.constant 0 : i32
    %c0_i32_1 = arith.constant 0 : i32
    return %c0_i32, %c0_i32_0 : i32, i32
  }
  func.func @transform_7(%arg0: i32) -> (i32, i32) {
    %c0_i32 = arith.constant 0 : i32
    %c0_i32_0 = arith.constant 0 : i32
    %c0_i32_1 = arith.constant 0 : i32
    return %c0_i32, %c0_i32_0 : i32, i32
  }
  func.func @transform_8(%arg0: i32) -> (i32, i32, i32) {
    %c0_i32 = arith.constant 0 : i32
    %c0_i32_0 = arith.constant 0 : i32
    %c0_i32_1 = arith.constant 0 : i32
    %c0_i32_2 = arith.constant 0 : i32
    return %c0_i32, %c0_i32_0, %c0_i32_1 : i32, i32, i32
  }
  func.func @transform_9(%arg0: i32) -> (i32, i32) {
    %c0_i32 = arith.constant 0 : i32
    %c0_i32_0 = arith.constant 0 : i32
    %c0_i32_1 = arith.constant 0 : i32
    return %c0_i32, %c0_i32_0 : i32, i32
  }
  func.func @transform_10(%arg0: i32) -> (i32, i32) {
    %c0_i32 = arith.constant 0 : i32
    %c0_i32_0 = arith.constant 0 : i32
    %c0_i32_1 = arith.constant 0 : i32
    return %c0_i32, %c0_i32_0 : i32, i32
  }
  func.func @transform_11(%arg0: i32) -> (i32, i32) {
    %c0_i32 = arith.constant 0 : i32
    %c0_i32_0 = arith.constant 0 : i32
    %c0_i32_1 = arith.constant 0 : i32
    return %c0_i32, %c0_i32_0 : i32, i32
  }
  func.func @transform_12(%arg0: i32) -> (i32, i32) {
    %c0_i32 = arith.constant 0 : i32
    %c0_i32_0 = arith.constant 0 : i32
    %c0_i32_1 = arith.constant 0 : i32
    return %c0_i32, %c0_i32_0 : i32, i32
  }
  func.func @transform_13(%arg0: i32) -> (i32, i32) {
    %c0_i32 = arith.constant 0 : i32
    %c0_i32_0 = arith.constant 0 : i32
    %c0_i32_1 = arith.constant 0 : i32
    return %c0_i32, %c0_i32_0 : i32, i32
  }
  func.func @transform_14(%arg0: i32) -> (i32, i32, i32) {
    %c0_i32 = arith.constant 0 : i32
    %c0_i32_0 = arith.constant 0 : i32
    %c0_i32_1 = arith.constant 0 : i32
    return %arg0, %c0_i32, %c0_i32_0 : i32, i32, i32
  }
}

</mosaic_0001>

<bundles_post_ra>
// kernel: tpu_custom_call.1
= control target key start
LH: loop header
LB: loop body
LE: loop exit
PB: predicated region body
PF: predicated region fallthrough
CT: control target
= control target key end

     0   :  { %s1724_s0 = inlined_call_operand.vmem [shape: bf16[32,32], index: 0, kind: input, shape index: {}]   ;;  %s1725_s1 = inlined_call_operand.vmem [shape: f32[32,1], index: 1, kind: input, shape index: {}]   ;;  %s1726_s2 = inlined_call_operand.vmem [shape: f32[1,1,32], index: 2, kind: input, shape index: {}]   ;;  %s1727_s3 = inlined_call_operand.vmem [shape: bf16[3,32,1], index: 3, kind: input, shape index: {}]   ;;  %s1728_s4 = inlined_call_operand.hbm [shape: bf16[3,32,64], index: 4, kind: input, shape index: {}]   ;;  %s1729_s5 = inlined_call_operand.vmem [shape: f32[1,64], index: 5, kind: input, shape index: {}]   ;;  %s1730_s6 = inlined_call_operand.vmem [shape: f32[1,64], index: 6, kind: input, shape index: {}]   ;;  %s1731_s7 = inlined_call_operand.vmem [shape: f32[1,64], index: 7, kind: input, shape index: {}]   ;;  %s1732_s8 = inlined_call_operand.vmem [shape: bf16[3,64,64], index: 8, kind: input, shape index: {}]   ;;  %s1733_s9 = inlined_call_operand.vmem [shape: f32[1,64], index: 9, kind: input, shape index: {}]   ;;  %s1734_s10 = inlined_call_operand.vmem [shape: f32[1,64], index: 10, kind: input, shape index: {}]   ;;  %s1735_s11 = inlined_call_operand.vmem [shape: f32[1,64], index: 11, kind: input, shape index: {}]   ;;  %s1736_s12 = inlined_call_operand.vmem [shape: bf16[1,64], index: 12, kind: input, shape index: {}]   ;;  %s1737_s13 = inlined_call_operand.<no memory space> [shape: f32[1,1], index: 13, kind: input, shape index: {}]   ;;  %s1738_s14 = inlined_call_operand.hbm [shape: f32[1,1,32], index: 14, kind: output, shape index: {}]  }
   0x1   :  { %v19_v0 = vstv %s1737_s13 }
   0x2   :  { %20 = vst [vmem:[#allocation2] sm:$0x1] %v19_v0 }
   0x3   :  { %21 = vsyncpa [#allocation4], 0 }
   0x4   :  { %22 = vsyncpa [#allocation5], 0  ;;  %s1364_s15 = smov [#allocation3]   ;;  %s1316_s19 = scalar_lea.hbm %s1728_s4, 768 }
   0x5   :  { %s36_s16 = sshll.u32 %s1364_s15, 4  ;;  %p1317_p0 = scmp.ne.s32.totalorder %s1728_s4, %s1316_s19  ;;  %s37_s16 = int_to_ptr.vmem [resolvable:$true] %s36_s16 }
   0x6   :  { %p1320_p1 = scmp.lt.u32.totalorder %s1316_s19, %s1728_s4 }
   0x8   :  { %p1322_p2 = pnand %p1320_p1, %p1317_p0 }
   0xa   :  { %1325 = shalt.err (!%p1322_p2)
}
   0xb   :  { %s1326_s13 = scalar_lea.vmem %s37_s16, 768  ;;  %p1331_p4 = scmp.lt.s32.totalorder %s37_s16, %s37_s16 }
   0xc   :  { %p1327_p3 = scmp.ne.s32.totalorder %s37_s16, %s1326_s13  ;;  %p1332_p5 = scmp.lt.s32.totalorder %s1326_s13, %s1326_s13 }
   0xe   :  { %p1333_p6 = por %p1332_p5, %p1331_p4 }
  0x10   :  { %p1334_p7 = pnand %p1333_p6, %p1327_p3 }
  0x12   :  { %1337 = shalt.err (!%p1334_p7)
}
  0x13   :  { %s1365_s24 = smov 64   ;;  %s1366_s25 = smov 4  }
  0x14   :  { %42 = dma.hbm_to_vmem [thread:$0]  %s1728_s4, 768, %s37_s16, [#allocation4], %s1365_s24, %s1365_s24, %s1366_s25  }
  0x15   :  { %1360 = dma.done.wait [#allocation4], 768  }
  0x16   :  { %1361 = vsyncadd [#allocation4], 4294966528  ;;  %v1367_v1 = vmov 0   ;;  %v118_v2 = vld [vmem:[%s1727_s3 + $0x8] sm:$0xf]  ;;  %v1278_v6 = vld [vmem:[#allocation3 + $0x10] sm:$0xff]   ;;  %v128_v49 = vlaneseq }
  0x17   :  { %1277 = vset.pattern.permute.xlu1 %v1367_v1  ;;  %1276 = vset.pattern.permute.xlu0 %v1367_v1  ;;  %v116_v3 = vld [vmem:[%s1727_s3] sm:$0xf]  ;;  %v119_v4 = vld [vmem:[%s1727_s3 + $0xc] sm:$0xf]  ;;  %v117_v5 = vld [vmem:[%s1727_s3 + $0x4] sm:$0xf] }
  0x18   :  { %146 = vperm.xlu1 %1277, %v118_v2   ;;  %122 = vperm.xlu0 %1276, %v116_v3   ;;  %v1101_v7 = vld [vmem:[%s1727_s3 + $0x24] sm:$0xf]  ;;  %v1100_v8 = vld [vmem:[%s1727_s3 + $0x20] sm:$0xf]  ;;  %vm203_vm0 = vcmask 261120   ;;  %vm113_vm1 = vcmask 1040384  }
  0x19   :  { %v1279_v9 = vld [vmem:[#allocation3 + $0x18] sm:$0xff]   ;;  %v76_v11 = vld [vmem:[%s1724_s0 + $0x4] sm:$0xf]  ;;  %1184 = vmatprep.subr.bf16.mxu0 %v1278_v6  ;;  %v77_v15 = vld [vmem:[%s1724_s0 + $0x8] sm:$0xf]  ;;  %vm338_vm5 = vcmask 1047552  }
  0x1a   :  { %v75_v10 = vld [vmem:[%s1724_s0] sm:$0xf]  ;;  %1185 = vmatpush3.bf16.msra.mxu0 %v1278_v6  ;;  %v78_v16 = vld [vmem:[%s1724_s0 + $0xc] sm:$0xf]  ;;  %vm95_vm2 = vsmask.f32 256 }
  0x1b   :  { %v65_v12 = vld [vmem:[%s1725_s1] sm:$0xff]  ;;  %v1087_v13 = vcombine.low %v75_v10, %v76_v11  ;;  %v1099_v14 = vcombine.low %v75_v10, %v75_v10  ;;  %v1103_v17 = vld [vmem:[%s1727_s3 + $0x2c] sm:$0xf]  ;;  %v1102_v18 = vld [vmem:[%s1727_s3 + $0x28] sm:$0xf]  ;;  %1186 = vmatprep.subr.bf16.mxu0 %v1279_v9  ;;  %v1086_v23 = vcombine.low %v78_v16, %v78_v16  ;;  %v1088_v24 = vcombine.low %v77_v15, %v78_v16  ;;  %s1371_s17 = smov [#allocation6]  }
  0x1c   :  { %158 = vperm.xlu1 %1277, %v119_v4   ;;  %134 = vperm.xlu0 %1276, %v117_v5   ;;  %v1282_v22 = vld [vmem:[#allocation3] sm:$0xff]   ;;  %vm324_vm3 = vsmask.f32 7424  ;;  %v69_v25 = vsub.f32 1.0, %v65_v12  ;;  %vm1504_vm4 = vmand %vm113_vm1, %vm95_vm2  ;;  %v1285_v34 = vld [vmem:[#allocation3 + $0x8] sm:$0xff]   ;;  %v1520_v51 = vshrl.u32 %v128_v49, 7 }
  0x1d   :  { %v97_v19 = vshrl.u32 %v1087_v13, 16  ;;  %v100_v20 = vshll.u32 %v1087_v13, 16  ;;  %1188 = vmatprep.mubr.msk.bf16.mxu0 %vm203_vm0, %v1087_v13  ;;  %v334_v21 = vshll.u32 %v1099_v14, 16  ;;  %v83_v27 = vshrl.u32 %v1086_v23, 16  ;;  %v1286_v40 = vld [vmem:[#allocation3 + $0x20] sm:$0xff]   ;;  %vm1512_vm6 = vmand %vm338_vm5, %vm324_vm3  ;;  %v1287_v5 = vld [vmem:[#allocation3 + $0x28] sm:$0xff]  }
  0x1e   :  { %1187 = vmatpush3.bf16.msra.mxu0 %v1279_v9  ;;  %v104_v29 = vshrl.u32 %v1088_v24, 16  ;;  %v107_v30 = vshll.u32 %v1088_v24, 16  ;;  %v1368_v47 = vmov 839922192   ;;  %v1110_v14 = vld [vmem:[%s1729_s5] ss:$0 sm:$0xff] }
  0x1f   :  { %v325_v26 = vrot.slane %v100_v20, 1  ;;  %v99_v28 = vrot.slane %v97_v19, 7  ;;  %1192 = vmatprep.subr.bf16.mxu0 %v1282_v22  ;;  %v85_v32 = vrot.slane %v83_v27, 3  ;;  %v336_v36 = vrot.slane %v334_v21, 1  ;;  %v1290_v49 = vld [vmem:[%s1732_s8 + $0x30] sm:$0xff]   ;;  %v1296_v31 = vld [vmem:[%s1732_s8 + $0x40] sm:$0xff]  }
  0x20   :  { %360 = vperm.xlu1 %1277, %v1101_v7   ;;  %348 = vperm.xlu0 %1276, %v1100_v8   ;;  %v106_v37 = vrot.slane %v104_v29, 7  ;;  %v327_v38 = vrot.slane %v107_v30, 1  ;;  %v126_v48 = vunpack.c.l.s4 %v1368_v47  ;;  %vm499_vm7 = vcmask 523264   ;;  %v1288_v47 = vld [vmem:[%s1732_s8 + $0x20] sm:$0xff]   ;;  %s1077_s18 = sshll.u32 %s1371_s17, 4  ;;  %s1078_s18 = int_to_ptr.vmem [resolvable:$true] %s1077_s18 }
  0x21   :  { %v102_v33 = vor.u32 %v100_v20, %v99_v28  ;;  %v326_v35 = vor.u32 %v325_v26, %v97_v19  ;;  %1189 = vmatmul.mubr.msk.bf16.vlgmr.msra.gmra.mrb[0].mxu0 %vm203_vm0, %v1088_v24  ;;  %1208 = vmatprep.subr.bf16.mxu1 %v1288_v47  ;;  %vm1370_vm8 = vmmov 0   ;;  %vm1069_vm9 = vcmask 253952   ;;  %s1342_s4 = scalar_lea.vmem %s1078_s18, 32  ;;  %p1343_p9 = scmp.lt.s32.totalorder %s1078_s18, %s1078_s18 }
  0x22   :  { %1193 = vmatpush3.bf16.msra.mxu0 %v1282_v22  ;;  %v109_v42 = vor.u32 %v107_v30, %v106_v37  ;;  %v329_v44 = vor.u32 %v327_v38, %v104_v29  ;;  %v127_v50 = vunpack.c.0.s8 %v126_v48  ;;  %1209 = vmatpush3.bf16.msra.mxu1 %v1288_v47  ;;  %v1289_v48 = vld [vmem:[%s1732_s8 + $0x28] sm:$0xff]  }
  0x23   :  { %v115_v39 = vsel %vm1504_vm4, %v85_v32, %v102_v33  ;;  %v328_v43 = vsel %vm324_vm3, %v326_v35, %v327_v38  ;;  %1194 = vmatprep.subr.bf16.mxu0 %v1285_v34  ;;  %1210 = vmatprep.subr.bf16.mxu1 %v1289_v48 }
  0x24   :  { %384 = vperm.xlu1 %1277, %v1103_v17   ;;  %372 = vperm.xlu0 %1276, %v1102_v18   ;;  %v110_v45 = vsel %vm95_vm2, %v99_v28, %v109_v42  ;;  %v340_v46 = vsel %vm1512_vm6, %v329_v44, %v336_v36  ;;  %v130_v54 = vsub.s32 %v127_v50, %v1520_v51  ;;  %v1291_v50 = vld [vmem:[%s1732_s8 + $0x38] sm:$0xff]  }
  0x26   :  { %1195 = vmatpush3.bf16.msra.mxu0 %v1285_v34  ;;  %1211 = vmatpush3.bf16.msra.mxu1 %v1289_v48 }
  0x27   :  { %1200 = vmatprep.subr.bf16.mxu0 %v1286_v40  ;;  %1212 = vmatprep.subr.bf16.mxu1 %v1290_v49 }
  0x28   :  { %584 = vperm.xlu1 %1277, %v69_v25  }
  0x2a   :  { %1213 = vmatpush3.bf16.msra.mxu1 %v1290_v49 }
  0x2b   :  { %1214 = vmatprep.subr.bf16.mxu1 %v1291_v50 }
  0x2e   :  { %1215 = vmatpush3.bf16.msra.mxu1 %v1291_v50 }
  0x97   :  { %v147_v52 = vpop.permute.xlu1 %146  ;;  %v123_v53 = vpop.permute.xlu0 %122 }
  0x98   :  { %v155_v57 = vrot.slane %v147_v52, %v130_v54  ;;  %v131_v58 = vrot.slane %v123_v53, %v130_v54  ;;  %v1594_v52 = vld [vmem:[%s1732_s8] sm:$0xff]  }
  0x99   :  { %1220 = vmatprep.subr.bf16.mxu1 %v1594_v52 }
  0x9b   :  { %v159_v55 = vpop.permute.xlu1 %158  ;;  %v135_v56 = vpop.permute.xlu0 %134 }
  0x9c   :  { %v167_v59 = vrot.slane %v159_v55, %v130_v54  ;;  %v143_v60 = vrot.slane %v135_v56, %v130_v54 }
  0x9e   :  { %v1523_v61 = vcombine.low %v155_v57, %v167_v59  ;;  %v1525_v62 = vcombine.low %v131_v58, %v143_v60 }
  0x9f   :  { %v361_v63 = vpop.permute.xlu1 %360  ;;  %v349_v0 = vpop.permute.xlu0 %348 }
  0xa0   :  { %v181_v1 = vmul.bf16 %v1523_v61, %v110_v45  ;;  %v180_v2 = vmul.bf16 %v1525_v62, %v115_v39  ;;  %v369_v3 = vrot.slane %v361_v63, %v130_v54  ;;  %v357_v4 = vrot.slane %v349_v0, %v130_v54  ;;  %v66_v45 = vld [vmem:[%s1725_s1 + $0x8] sm:$0xff] }
  0xa2   :  { %v1529_v6 = vcombine.low %v357_v4, %v369_v3  ;;  %1196 = vmatprep.mubr.msk.bf16.mxu0 %vm203_vm0, %v180_v2 }
  0xa3   :  { %v385_v7 = vpop.permute.xlu1 %384  ;;  %v373_v8 = vpop.permute.xlu0 %372  ;;  %1197 = vmatmul.mubr.msk.bf16.vlgmr.msra.gmra.mrb[0].mxu0 %vm203_vm0, %v181_v1 }
  0xa4   :  { %v406_v9 = vmul.bf16 %v1529_v6, %v328_v43  ;;  %1201 = vmatpush3.bf16.msra.mxu0 %v1286_v40  ;;  %v393_v10 = vrot.slane %v385_v7, %v130_v54  ;;  %v381_v11 = vrot.slane %v373_v8, %v130_v54  ;;  %v67_v40 = vld [vmem:[%s1725_s1 + $0x10] sm:$0xff]  ;;  %v68_v43 = vld [vmem:[%s1725_s1 + $0x18] sm:$0xff] }
  0xa5   :  { %1202 = vmatprep.subr.bf16.mxu0 %v1287_v5  ;;  %v71_v42 = vsub.f32 1.0, %v67_v40  ;;  %v72_v44 = vsub.f32 1.0, %v68_v43 }
  0xa6   :  { %1204 = vmatprep.mubr.msk.bf16.mxu0 %vm203_vm0, %v406_v9  ;;  %v1535_v12 = vcombine.low %v381_v11, %v393_v10 }
  0xa7   :  { %v1597_v53 = vpop.permute.xlu1 %584 }
  0xa8   :  { %1203 = vmatpush3.bf16.msra.mxu0 %v1287_v5  ;;  %v407_v13 = vmul.bf16 %v1535_v12, %v340_v46  ;;  %v70_v46 = vsub.f32 1.0, %v66_v45 }
  0xaf   :  { %1205 = vmatmul.mubr.msk.bf16.vlgmr.msra.gmra.mrb[0].mxu0 %vm203_vm0, %v407_v13 }
 0x182   :  { %v1206_v15 = vpop.f32.mrb[0].mxu0 }
 0x183   :  { %v493_v16 = vadd.f32 %v1206_v15, %v1110_v14  ;;  %v465_v17 = vpop.f32.mrb[1].mxu0 }
 0x184   :  { %v491_v18 = vadd.f32 %v1110_v14, %v465_v17  ;;  %v1207_v19 = vpop.f32.mrb[2].mxu0 }
 0x185   :  { %v1542_v20 = vmax.f32 %v493_v16, 0.0  ;;  %v468_v21 = vpop.f32.mrb[3].mxu0  ;;  %v494_v24 = vadd.f32 %v1207_v19, %v1110_v14 }
 0x186   :  { %v492_v22 = vadd.f32 %v1110_v14, %v468_v21  ;;  %v1544_v23 = vmax.f32 %v491_v18, 0.0 }
 0x187   :  { %v506_v25 = vsel %vm499_vm7, %v1542_v20, 0.0  ;;  %v518_v26 = vmul.f32 %v1542_v20, %v1542_v20  ;;  %v1553_v29 = vmax.f32 %v494_v24, 0.0 }
 0x188   :  { %507 = vadd.xlane.f32.xlu0 %v506_v25  ;;  %v1550_v27 = vmax.f32 %v492_v22, 0.0  ;;  %v500_v30 = vsel %vm499_vm7, %v1544_v23, 0.0  ;;  %v516_v33 = vmul.f32 %v1544_v23, %v1544_v23 }
 0x189   :  { %v526_v28 = vsel %vm499_vm7, %v518_v26, 0.0  ;;  %v509_v34 = vsel %vm499_vm7, %v1553_v29, 0.0  ;;  %v519_v35 = vmul.f32 %v1553_v29, %v1553_v29 }
 0x18a   :  { %527 = vadd.xlane.f32.xlu1 %v526_v28  ;;  %v503_v32 = vsel %vm499_vm7, %v1550_v27, 0.0  ;;  %v520_v36 = vsel %vm499_vm7, %v516_v33, 0.0  ;;  %v517_v38 = vmul.f32 %v1550_v27, %v1550_v27 }
 0x18b   :  { %v529_v37 = vsel %vm499_vm7, %v519_v35, 0.0 }
 0x18c   :  { %501 = vadd.xlane.f32.xlu0 %v500_v30  ;;  %v523_v39 = vsel %vm499_vm7, %v517_v38, 0.0 }
 0x18e   :  { %504 = vadd.xlane.f32.xlu1 %v503_v32  ;;  %v1111_v32 = vld [vmem:[%s1730_s6] ss:$0 sm:$0xff] }
 0x190   :  { %510 = vadd.xlane.f32.xlu0 %v509_v34 }
 0x192   :  { %521 = vadd.xlane.f32.xlu1 %v520_v36 }
 0x194   :  { %530 = vadd.xlane.f32.xlu0 %v529_v37 }
 0x198   :  { %524 = vadd.xlane.f32.xlu0 %v523_v39 }
 0x1a3   :  { %594 = vperm.xlu1 %1277, %v71_v42  }
 0x1a7   :  { %599 = vperm.xlu1 %1277, %v72_v44  }
 0x1ae   :  { %589 = vperm.xlu0 %1276, %v70_v46  }
 0x215   :  { %v508_v54 = vpop.xlane.xlu0 %507 }
 0x216   :  { %v514_v55 = vmul.f32 0.015625, %v508_v54 }
 0x217   :  { %v528_v56 = vpop.xlane.xlu1 %527 }
 0x218   :  { %v538_v57 = vmul.f32 %v514_v55, %v514_v55  ;;  %v534_v58 = vmul.f32 0.015625, %v528_v56  ;;  %v546_v25 = vsub.f32 %v1542_v20, %v514_v55  ;;  %v1112_v20 = vld [vmem:[%s1731_s7] ss:$0 sm:$0xff] }
 0x219   :  { %v502_v59 = vpop.xlane.xlu0 %501 }
 0x21a   :  { %v542_v60 = vsub.f32 %v534_v58, %v538_v57  ;;  %v512_v0 = vmul.f32 0.015625, %v502_v59  ;;  %v1293_v58 = vld [vmem:[%s1732_s8 + $0x8] sm:$0xff]  }
 0x21b   :  { %v505_v63 = vpop.xlane.xlu1 %504 }
 0x21c   :  { %v550_v2 = vadd.f32 1e-05, %v542_v60  ;;  %v536_v5 = vmul.f32 %v512_v0, %v512_v0  ;;  %v513_v8 = vmul.f32 0.015625, %v505_v63  ;;  %v544_v26 = vsub.f32 %v1544_v23, %v512_v0 }
 0x21d   :  { %v511_v1 = vpop.xlane.xlu0 %510 }
 0x21e   :  { %v515_v3 = vmul.f32 0.015625, %v511_v1  ;;  %1300 = vrsqrt.f32 %v550_v2  ;;  %v537_v17 = vmul.f32 %v513_v8, %v513_v8  ;;  %v545_v23 = vsub.f32 %v1550_v27, %v513_v8  ;;  %v1294_v1 = vld [vmem:[%s1732_s8 + $0x10] sm:$0xff]  }
 0x21f   :  { %v522_v4 = vpop.xlane.xlu1 %521 }
 0x220   :  { %v532_v7 = vmul.f32 0.015625, %v522_v4  ;;  %v539_v10 = vmul.f32 %v515_v3, %v515_v3  ;;  %v547_v33 = vsub.f32 %v1553_v29, %v515_v3 }
 0x221   :  { %v531_v9 = vpop.xlane.xlu0 %530 }
 0x222   :  { %v540_v11 = vsub.f32 %v532_v7, %v536_v5  ;;  %v535_v13 = vmul.f32 0.015625, %v531_v9 }
 0x223   :  { %v1605_v36 = vpop.permute.xlu1 %594 }
 0x224   :  { %v548_v14 = vadd.f32 1e-05, %v540_v11  ;;  %v543_v15 = vsub.f32 %v535_v13, %v539_v10 }
 0x225   :  { %v525_v16 = vpop.xlane.xlu0 %524 }
 0x226   :  { %1302 = vrsqrt.f32 %v548_v14  ;;  %v551_v18 = vadd.f32 1e-05, %v543_v15  ;;  %v533_v19 = vmul.f32 0.015625, %v525_v16  ;;  %v1297_v15 = vld [vmem:[%s1732_s8 + $0x48] sm:$0xff]  }
 0x227   :  { %v1611_v46 = vpop.permute.xlu1 %599 }
 0x228   :  { %1304 = vrsqrt.f32 %v551_v18  ;;  %v541_v21 = vsub.f32 %v533_v19, %v537_v17  ;;  %v1301_v24 = vpop.eup %1300  ;;  %v1298_v17 = vld [vmem:[%s1732_s8 + $0x50] sm:$0xff]  }
 0x229   :  { %v558_v28 = vmul.f32 %v1301_v24, %v546_v25 }
 0x22a   :  { %v549_v22 = vadd.f32 1e-05, %v541_v21  ;;  %v1147_v21 = vld [vmem:[%s1733_s9] ss:$0 sm:$0xff] }
 0x22b   :  { %v569_v37 = vmul.f32 %v1111_v32, %v558_v28 }
 0x22c   :  { %1306 = vrsqrt.f32 %v549_v22 }
 0x22d   :  { %v580_v43 = vadd.f32 %v1112_v20, %v569_v37  ;;  %v1615_v54 = vpop.permute.xlu0 %589 }
 0x22f   :  { %v604_v49 = vmul.f32 %v1605_v36, %v580_v43 }
 0x230   :  { %v1303_v30 = vpop.eup %1302 }
 0x231   :  { %v556_v34 = vmul.f32 %v1303_v30, %v544_v26 }
 0x232   :  { %v1305_v35 = vpop.eup %1304 }
 0x233   :  { %v559_v38 = vmul.f32 %v1305_v35, %v547_v33  ;;  %v567_v40 = vmul.f32 %v1111_v32, %v556_v34 }
 0x235   :  { %v570_v39 = vmul.f32 %v1111_v32, %v559_v38  ;;  %v578_v48 = vadd.f32 %v1112_v20, %v567_v40 }
 0x236   :  { %v1307_v42 = vpop.eup %1306 }
 0x237   :  { %v581_v44 = vadd.f32 %v1112_v20, %v570_v39  ;;  %v557_v45 = vmul.f32 %v1307_v42, %v545_v23  ;;  %v602_v27 = vmul.f32 %v1597_v53, %v578_v48  ;;  %v1009_v48 = vld [vmem:[#allocation2] sm:$0x1] }
 0x239   :  { %v605_v29 = vmul.f32 %v1611_v46, %v581_v44  ;;  %v568_v47 = vmul.f32 %v1111_v32, %v557_v45 }
 0x23b   :  { %v579_v50 = vadd.f32 %v1112_v20, %v568_v47  ;;  %v607_v55 = vpack.c.bf16 %v605_v29, %v604_v49  ;;  %v1369_v49 = vmov 0.0  }
 0x23c   :  { %1244 = vmatprep.subr.bf16.mxu0 %v1369_v49  ;;  %1248 = vmatprep.mubr.msk.bf16.mxu0 %vm1370_vm8, %v1369_v49 }
 0x23d   :  { %v603_v56 = vmul.f32 %v1615_v54, %v579_v50  ;;  %v609_v59 = vshrl.u32 %v607_v55, 16  ;;  %v620_v7 = vshll.u32 %v607_v55, 16 }
 0x23f   :  { %v606_v57 = vpack.c.bf16 %v603_v56, %v602_v27  ;;  %v611_v2 = vrot.slane %v609_v59, 7  ;;  %v804_v11 = vrot.slane %v620_v7, 1 }
 0x241   :  { %v614_v60 = vshrl.u32 %v606_v57, 16  ;;  %1216 = vmatprep.mubr.msk.bf16.mxu1 %vm499_vm7, %v606_v57  ;;  %v617_v63 = vshll.u32 %v606_v57, 16  ;;  %v622_v10 = vor.u32 %v620_v7, %v611_v2  ;;  %v806_v18 = vor.u32 %v804_v11, %v609_v59 }
 0x242   :  { %1217 = vmatmul.mubr.msk.bf16.vlgmr.msra.gmra.mrb[0].mxu1 %vm499_vm7, %v607_v55 }
 0x243   :  { %v616_v0 = vrot.slane %v614_v60, 7  ;;  %1221 = vmatpush3.bf16.msra.mxu1 %v1594_v52  ;;  %v802_v4 = vrot.slane %v617_v63, 1  ;;  %v1295_v52 = vld [vmem:[%s1732_s8 + $0x18] sm:$0xff]  }
 0x244   :  { %1222 = vmatprep.subr.bf16.mxu1 %v1293_v58 }
 0x245   :  { %v619_v3 = vor.u32 %v617_v63, %v616_v0  ;;  %v803_v9 = vor.u32 %v802_v4, %v614_v60  ;;  %v623_v13 = vsel %vm95_vm2, %v616_v0, %v622_v10 }
 0x247   :  { %1223 = vmatpush3.bf16.msra.mxu1 %v1293_v58  ;;  %v626_v5 = vsel %vm1504_vm4, %v611_v2, %v619_v3  ;;  %v805_v14 = vsel %vm324_vm3, %v803_v9, %v804_v11 }
 0x248   :  { %1224 = vmatprep.subr.bf16.mxu1 %v1294_v1  ;;  %v627_v8 = vmul.bf16 %v1525_v62, %v626_v5  ;;  %v628_v62 = vmul.bf16 %v1523_v61, %v623_v13  ;;  %v811_v16 = vmul.bf16 %v1529_v6, %v805_v14  ;;  %v1299_v61 = vld [vmem:[%s1732_s8 + $0x58] sm:$0xff]   ;;  %v810_v6 = vsel %vm1512_vm6, %v806_v18, %v802_v4 }
 0x249   :  { %v812_v19 = vmul.bf16 %v1535_v12, %v810_v6  ;;  %v1148_v6 = vld [vmem:[%s1734_s10] ss:$0 sm:$0xff] }
 0x24a   :  { %1228 = vmatprep.mubr.msk.bf16.mxu1 %vm499_vm7, %v627_v8 }
 0x24b   :  { %1225 = vmatpush3.bf16.msra.mxu1 %v1294_v1 }
 0x24c   :  { %1226 = vmatprep.subr.bf16.mxu1 %v1295_v52 }
 0x24f   :  { %1227 = vmatpush3.bf16.msra.mxu1 %v1295_v52 }
 0x250   :  { %1232 = vmatprep.subr.bf16.mxu1 %v1296_v31 }
 0x252   :  { %1229 = vmatmul.mubr.msk.bf16.vlgmr.msra.gmra.mrb[0].mxu1 %vm499_vm7, %v628_v62 }
 0x253   :  { %1233 = vmatpush3.bf16.msra.mxu1 %v1296_v31  ;;  %1240 = vmatprep.mubr.msk.bf16.mxu1 %vm499_vm7, %v811_v16 }
 0x254   :  { %1234 = vmatprep.subr.bf16.mxu1 %v1297_v15 }
 0x257   :  { %1235 = vmatpush3.bf16.msra.mxu1 %v1297_v15 }
 0x258   :  { %1236 = vmatprep.subr.bf16.mxu1 %v1298_v17 }
 0x25b   :  { %1237 = vmatpush3.bf16.msra.mxu1 %v1298_v17 }
 0x25c   :  { %1238 = vmatprep.subr.bf16.mxu1 %v1299_v61 }
 0x25f   :  { %1239 = vmatpush3.bf16.msra.mxu1 %v1299_v61 }
 0x262   :  { %1241 = vmatmul.mubr.msk.bf16.vlgmr.msra.gmra.mrb[0].mxu1 %vm499_vm7, %v812_v19 }
 0x335   :  { %v1242_v22 = vpop.f32.mrb[0].mxu1 }
 0x336   :  { %v886_v24 = vpop.f32.mrb[1].mxu1  ;;  %v914_v30 = vadd.f32 %v1242_v22, %v1147_v21 }
 0x337   :  { %v912_v25 = vadd.f32 %v1147_v21, %v886_v24  ;;  %v1243_v26 = vpop.f32.mrb[2].mxu1 }
 0x338   :  { %v889_v28 = vpop.f32.mrb[3].mxu1  ;;  %v1668_v35 = vmax.f32 %v914_v30, 0.0  ;;  %v915_v38 = vadd.f32 %v1243_v26, %v1147_v21 }
 0x339   :  { %v1660_v32 = vmax.f32 %v912_v25, 0.0  ;;  %v913_v33 = vadd.f32 %v1147_v21, %v889_v28  ;;  %v1149_v25 = vld [vmem:[%s1735_s11] ss:$0 sm:$0xff] }
 0x33a   :  { %v926_v39 = vsel %vm499_vm7, %v1668_v35, 0.0  ;;  %v938_v40 = vmul.f32 %v1668_v35, %v1668_v35  ;;  %v1679_v42 = vmax.f32 %v915_v38, 0.0 }
 0x33b   :  { %v1662_v41 = vmax.f32 %v913_v33, 0.0  ;;  %v920_v12 = vsel %vm499_vm7, %v1660_v32, 0.0  ;;  %v936_v34 = vmul.f32 %v1660_v32, %v1660_v32 }
 0x33c   :  { %921 = vadd.xlane.f32.xlu0 %v920_v12  ;;  %v946_v44 = vsel %vm499_vm7, %v938_v40, 0.0  ;;  %v929_v45 = vsel %vm499_vm7, %v1679_v42, 0.0  ;;  %v939_v29 = vmul.f32 %v1679_v42, %v1679_v42 }
 0x33d   :  { %v923_v37 = vsel %vm499_vm7, %v1662_v41, 0.0  ;;  %v940_v20 = vsel %vm499_vm7, %v936_v34, 0.0  ;;  %v937_v23 = vmul.f32 %v1662_v41, %v1662_v41 }
 0x33e   :  { %924 = vadd.xlane.f32.xlu1 %v923_v37  ;;  %v949_v47 = vsel %vm499_vm7, %v939_v29, 0.0 }
 0x33f   :  { %v943_v43 = vsel %vm499_vm7, %v937_v23, 0.0 }
 0x340   :  { %941 = vadd.xlane.f32.xlu0 %v940_v20 }
 0x342   :  { %927 = vadd.xlane.f32.xlu1 %v926_v39 }
 0x344   :  { %944 = vadd.xlane.f32.xlu0 %v943_v43 }
 0x346   :  { %947 = vadd.xlane.f32.xlu1 %v946_v44 }
 0x348   :  { %930 = vadd.xlane.f32.xlu0 %v929_v45 }
 0x34c   :  { %950 = vadd.xlane.f32.xlu0 %v949_v47 }
 0x357   :  { %1012 = vperm.xlu1 %1277, %v1009_v48   ;;  %v1017_v48 = vsub.s32 0, %v1520_v51 }
 0x3c9   :  { %v922_v50 = vpop.xlane.xlu0 %921 }
 0x3ca   :  { %v932_v55 = vmul.f32 0.015625, %v922_v50 }
 0x3cb   :  { %v925_v27 = vpop.xlane.xlu1 %924 }
 0x3cc   :  { %v956_v57 = vmul.f32 %v932_v55, %v932_v55  ;;  %v933_v58 = vmul.f32 0.015625, %v925_v27  ;;  %v964_v17 = vsub.f32 %v1660_v32, %v932_v55 }
 0x3cd   :  { %v942_v56 = vpop.xlane.xlu0 %941 }
 0x3ce   :  { %v952_v59 = vmul.f32 0.015625, %v942_v56  ;;  %v957_v2 = vmul.f32 %v933_v58, %v933_v58  ;;  %v965_v21 = vsub.f32 %v1662_v41, %v933_v58 }
 0x3cf   :  { %v928_v60 = vpop.xlane.xlu1 %927 }
 0x3d0   :  { %v960_v63 = vsub.f32 %v952_v59, %v956_v57  ;;  %v934_v0 = vmul.f32 0.015625, %v928_v60 }
 0x3d1   :  { %v945_v1 = vpop.xlane.xlu0 %944 }
 0x3d2   :  { %v968_v3 = vadd.f32 1e-05, %v960_v63  ;;  %v953_v4 = vmul.f32 0.015625, %v945_v1  ;;  %v958_v7 = vmul.f32 %v934_v0, %v934_v0  ;;  %v966_v26 = vsub.f32 %v1668_v35, %v934_v0 }
 0x3d3   :  { %v948_v5 = vpop.xlane.xlu1 %947 }
 0x3d4   :  { %1308 = vrsqrt.f32 %v968_v3  ;;  %v961_v8 = vsub.f32 %v953_v4, %v957_v2  ;;  %v954_v52 = vmul.f32 0.015625, %v948_v5 }
 0x3d5   :  { %v931_v9 = vpop.xlane.xlu0 %930 }
 0x3d6   :  { %v969_v10 = vadd.f32 1e-05, %v961_v8  ;;  %v962_v11 = vsub.f32 %v954_v52, %v958_v7  ;;  %v935_v31 = vmul.f32 0.015625, %v931_v9 }
 0x3d7   :  { %v1013_v50 = vpop.permute.xlu1 %1012 }
 0x3d8   :  { %1310 = vrsqrt.f32 %v969_v10  ;;  %v970_v13 = vadd.f32 1e-05, %v962_v11  ;;  %v959_v62 = vmul.f32 %v935_v31, %v935_v31  ;;  %v967_v37 = vsub.f32 %v1679_v42, %v935_v31 }
 0x3d9   :  { %v951_v14 = vpop.xlane.xlu0 %950 }
 0x3da   :  { %1312 = vrsqrt.f32 %v970_v13  ;;  %v955_v15 = vmul.f32 0.015625, %v951_v14 }
 0x3dc   :  { %v963_v16 = vsub.f32 %v955_v15, %v959_v62 }
 0x3de   :  { %v1309_v61 = vpop.eup %1308  ;;  %v971_v18 = vadd.f32 1e-05, %v963_v16 }
 0x3df   :  { %v976_v19 = vmul.f32 %v1309_v61, %v964_v17 }
 0x3e0   :  { %1314 = vrsqrt.f32 %v971_v18 }
 0x3e1   :  { %v987_v22 = vmul.f32 %v1148_v6, %v976_v19 }
 0x3e2   :  { %v1311_v24 = vpop.eup %1310 }
 0x3e3   :  { %v977_v28 = vmul.f32 %v1311_v24, %v965_v21  ;;  %v998_v33 = vadd.f32 %v1149_v25, %v987_v22 }
 0x3e4   :  { %v1313_v30 = vpop.eup %1312 }
 0x3e5   :  { %v988_v32 = vmul.f32 %v1148_v6, %v977_v28  ;;  %v978_v12 = vmul.f32 %v1313_v30, %v966_v26  ;;  %v1002_v38 = vmul.f32 %v998_v33, %v1597_v53 }
 0x3e7   :  { %v999_v34 = vadd.f32 %v1149_v25, %v988_v32  ;;  %v989_v20 = vmul.f32 %v1148_v6, %v978_v12 }
 0x3e9   :  { %v1003_v41 = vmul.f32 %v999_v34, %v1615_v54  ;;  %v1000_v35 = vadd.f32 %v1149_v25, %v989_v20  ;;  %v1006_v54 = vld [vmem:[%s1736_s12] sm:$0x1]  ;;  %s1338_s12 = scalar_lea.vmem %s1078_s18, 16 }
 0x3ea   :  { %v1315_v23 = vpop.eup %1314  ;;  %p1339_p8 = scmp.ne.s32.totalorder %s1078_s18, %s1338_s12  ;;  %p1344_p10 = scmp.lt.s32.totalorder %s1342_s4, %s1338_s12 }
 0x3eb   :  { %v1007_v39 = vpack.c.bf16 %v1003_v41, %v1002_v38  ;;  %v979_v40 = vmul.f32 %v1315_v23, %v967_v37  ;;  %v1004_v29 = vmul.f32 %v1000_v35, %v1605_v36  ;;  %v1018_v36 = vrot.slane %v1013_v50, %v1017_v48 }
 0x3ec   :  { %p1345_p11 = por %p1344_p10, %p1343_p9 }
 0x3ed   :  { %v1023_v43 = vsel %vm499_vm7, %v1007_v39, 0  ;;  %v990_v44 = vmul.f32 %v1148_v6, %v979_v40 }
 0x3ee   :  { %1245 = vmatpush3.bf16.xpose.msra.mxu0 %v1023_v43  ;;  %p1346_p12 = pnand %p1345_p11, %p1339_p8 }
 0x3ef   :  { %1246 = vmatprep.subr.bf16.mxu0 %v1369_v49  ;;  %v1001_v45 = vadd.f32 %v1149_v25, %v990_v44  ;;  %v73_v49 = vld [vmem:[%s1726_s2] sm:$0x1] }
 0x3f0   :  { %v74_v55 = vsub.f32 1.0, %v73_v49 }
 0x3f1   :  { %v1005_v47 = vmul.f32 %v1001_v45, %v1611_v46 }
 0x3f3   :  { %v1008_v42 = vpack.c.bf16 %v1005_v47, %v1004_v29 }
 0x3f5   :  { %v1026_v53 = vsel %vm499_vm7, %v1008_v42, 0 }
 0x3f6   :  { %1247 = vmatpush3.bf16.xpose.msra.mxu0 %v1026_v53 }
 0x3fd   :  { %1249 = vmatmul.mubr.msk.bf16.vlgmr.msra.gmra.mrb[4].mxu0 %vm499_vm7, %v1006_v54 }
 0x4d0   :  { %v1062_v46 = vpop.f32.mrb[4].mxu0 }
 0x4d1   :  { %v1063_v27 = vadd.f32 %v1062_v46, %v1018_v36  ;;  %v1250_v56 = vpop.f32.mrb[5].mxu0 }
 0x4d2   :  { %v1065_v57 = vpop.f32.mrb[6].mxu0 }
 0x4d3   :  { %v1068_v58 = vmul.f32 %v1063_v27, %v74_v55  ;;  %v1251_v59 = vpop.f32.mrb[7].mxu0 }
 0x4d5   :  { %1070 = vst.msk [vmem:[#allocation6] sm:$0x1] %vm1069_vm9, %v1068_v58 }
 0x4d6   :  { %1349 = shalt.err (!%p1346_p12)
}
 0x4d7   :  { %s1350_s6 = scalar_lea.hbm %s1738_s14, 16 }
 0x4d8   :  { %p1351_p13 = scmp.ne.s32.totalorder %s1738_s14, %s1350_s6  ;;  %p1354_p0 = scmp.lt.u32.totalorder %s1350_s6, %s1738_s14 }
 0x4da   :  { %p1356_p1 = pnand %p1354_p0, %p1351_p13 }
 0x4dc   :  { %1359 = shalt.err (!%p1356_p1)
}
 0x4dd   :  { %1080 = dma.vmem_to_hbm [thread:$0]  %s1078_s18, 16, %s1738_s14, [#allocation5]  }
 0x4de   :  { %1362 = dma.done.wait [#allocation5], 16  }
 0x4df   :  { %1363 = vsyncadd [#allocation5], 4294967280 }
 0x4e0   :  { %1084 = vsyncpa [#allocation4], 1 }
 0x4e1   :  { %1085 = vsyncpa [#allocation5], 1 }

</bundles_post_ra>
